<compile_context>
chip_gen: v5e
topology: v5e:2x2
jax: 0.10.0
libtpu: 0.0.40
codegen_flags: <defaults>
</compile_context>

<pallas_src>
import math
import functools

import jax
import jax.numpy as jnp
from jax.experimental import pallas as pl
from jax.experimental.pallas import tpu as pltpu


def _build_pe(max_len: int, d_model: int) -> jnp.ndarray:
    """Deterministic positional-encoding buffer, matching the torch __init__."""
    position = jnp.arange(0, max_len, dtype=jnp.float32)[:, None]             # (L, 1)
    div_term = jnp.exp(jnp.arange(0, d_model, 2, dtype=jnp.float32)
                       * (-math.log(10000.0) / d_model))                      # (D/2,)
    pe = jnp.zeros((max_len, d_model), dtype=jnp.float32)
    pe = pe.at[:, 0::2].set(jnp.sin(position * div_term))
    pe = pe.at[:, 1::2].set(jnp.cos(position * div_term))
    # pe.unsqueeze(0).transpose(0, 1) -> (max_len, 1, d_model)
    return pe[:, None, :]


def _hash_u32(x):
    """splitmix32-style finalizer (5 VPU int ops, 2 muls); portable, no pltpu.prng_*."""
    x = x ^ (x >> 16)
    x = x * jnp.uint32(0x7FEB352D)
    x = x ^ (x >> 15)
    x = x * jnp.uint32(0x846CA68B)
    x = x ^ (x >> 16)
    return x


def _pos_enc_kernel(seed_ref, x_ref, pe_ref, o_ref, *,
                    dropout_p, training, tile_rows, block_cols, nb, bd):
    x = x_ref[...]                                   # (TS, NB*D)  lane-dense slab
    pe = pe_ref[...]                                 # (TS, D), already x.dtype
    # Broadcast pe over the NB batches packed in the lane axis (pure lane concat).
    pe_b = pe if nb == 1 else jnp.concatenate([pe] * nb, axis=1)
    y = x + pe_b

    if training and dropout_p > 0.0:
        shape = x.shape
        # Single flat uint32 counter per element (globally unique up to 2^32
        # elements, after which it wraps -- see notes).
        r = jax.lax.broadcasted_iota(jnp.int32, shape, 0).astype(jnp.uint32)
        c = jax.lax.broadcasted_iota(jnp.int32, shape, 1).astype(jnp.uint32)
        base = (pl.program_id(0).astype(jnp.uint32)
                * jnp.uint32((tile_rows * bd) & 0xFFFFFFFF)
                + pl.program_id(1).astype(jnp.uint32)
                * jnp.uint32(block_cols & 0xFFFFFFFF))
        seed_mix = seed_ref[0].astype(jnp.uint32) * jnp.uint32(0x9E3779B9)
        idx = r * jnp.uint32(bd & 0xFFFFFFFF) + c + base + seed_mix
        bits = _hash_u32(idx)
        # keep iff bits >= p * 2^32  (P(keep) = 1 - p); integer threshold,
        # no float uniform.  (For p -> 1.0 the keep prob floors at ~2^-32.)
        thr = min(int(round(float(dropout_p) * 4294967296.0)), 4294967295)
        keep = bits >= jnp.uint32(thr)
        scale = jnp.asarray(1.0 / (1.0 - dropout_p), dtype=y.dtype)
        y = y * jnp.where(keep, scale, jnp.asarray(0.0, dtype=y.dtype))

    o_ref[...] = y.astype(o_ref.dtype)


def _vmem_capacity_bytes() -> int:
    """Per-core VMEM capacity; conservative fallback if the query is unavailable."""
    try:
        info = pltpu.get_tpu_info()
        cap = getattr(info, "vmem_capacity_bytes", None)
        if cap:
            return int(cap)
    except Exception:
        pass
    return 64 * 1024 * 1024          # worst case (v7x per-TC)


def _choose_tiles(S, B, D, itemsize, target_block_bytes):
    """Pick (row-tile TS, batches-per-column-block NB) for the (S, B*D) slab."""
    BD = B * D
    row_bytes = max(1, BD * itemsize)
    rows = target_block_bytes // row_bytes
    if rows >= S:
        TS = S                                   # full axis -> always layout-legal
    else:
        TS = max(8, (rows // 8) * 8)             # second-minor dim must be %8
    NB = B
    # If even the minimum-height tile over-shoots the budget (huge B*D), split
    # the flattened column axis in whole batches (lane-aligned iff D % 128 == 0).
    if TS * row_bytes > target_block_bytes and B > 1 and D % 128 == 0:
        NB = max(1, min(B, target_block_bytes // max(1, TS * D * itemsize)))
        while B % NB != 0:
            NB -= 1
        NB = max(1, NB)
    return TS, NB


def positional_encoding(x, pe, *, dropout_p=0.1, training=True, seed=0):
    """x: (S, B, D); pe: (max_len, 1, D). Returns (S, B, D) = dropout(x + pe[:S])."""
    S, B, D = x.shape
    BD = B * D
    pe_slice = pe[:S, 0, :].astype(x.dtype)            # (S, D); halves pe DMA for bf16
    x2 = x.reshape(S, BD)                              # lane-dense 2-D slab
    seed_arr = jnp.asarray([seed], dtype=jnp.int32)

    itemsize = jnp.dtype(x.dtype).itemsize
    vmem_cap = _vmem_capacity_bytes()
    vmem_limit = min(vmem_cap // 2, 64 * 1024 * 1024)  # 64 MiB v5e/v6e, 32 MiB v7x
    target_block = max(1 << 20, vmem_limit // 8)       # ~8 MiB v5e/v6e, ~4 MiB v7x

    TS, NB = _choose_tiles(S, B, D, itemsize, target_block)
    block_cols = NB * D
    grid = (pl.cdiv(S, TS), B // NB)

    kernel = functools.partial(
        _pos_enc_kernel,
        dropout_p=float(dropout_p), training=bool(training),
        tile_rows=int(TS), block_cols=int(block_cols), nb=int(NB), bd=int(BD))

    # NOTE: input_output_aliases={1: 0} (x -> out) would enable buffer donation
    # for long sequences; omitted here to keep the call maximally portable.
    out2 = pl.pallas_call(
        kernel,
        out_shape=jax.ShapeDtypeStruct((S, BD), x.dtype),
        grid_spec=pltpu.PrefetchScalarGridSpec(
            num_scalar_prefetch=1,                     # seed lives in SMEM
            grid=grid,
            in_specs=[
                pl.BlockSpec((TS, block_cols), lambda i, j, s: (i, j)),
                pl.BlockSpec((TS, D),          lambda i, j, s: (i, 0)),
            ],
            out_specs=pl.BlockSpec((TS, block_cols), lambda i, j, s: (i, j)),
        ),
        compiler_params=pltpu.CompilerParams(
            dimension_semantics=("parallel", "parallel"),   # tiles are independent
            vmem_limit_bytes=int(vmem_limit),
        ),
    )(seed_arr, x2, pe_slice)
    return out2.reshape(S, B, D)


if __name__ == "__main__":
    d_model = 32
    max_len = 64          # small max_len for the demo (module default is 5000)
    seq, batch = 8, 2
    dropout_p = 0.1

    key = jax.random.PRNGKey(0)
    x = jax.random.normal(key, (seq, batch, d_model), dtype=jnp.float32)
    pe = _build_pe(max_len, d_model)

    ref = x + pe[:seq, :]

    # Eval mode (dropout = identity) -> deterministic, check against reference.
    out_eval = positional_encoding(x, pe, dropout_p=dropout_p, training=False)
    out_eval = jax.block_until_ready(out_eval)
    assert out_eval.shape == (seq, batch, d_model)
    assert jnp.allclose(out_eval, ref, atol=1e-6), "eval-mode mismatch vs reference"

    # Training mode: inverted dropout -> each entry is either 0 or ref / (1 - p).
    out_train = positional_encoding(x, pe, dropout_p=dropout_p, training=True, seed=1234)
    out_train = jax.block_until_ready(out_train)
    assert out_train.shape == (seq, batch, d_model)
    assert bool(jnp.all(jnp.isfinite(out_train)))
    scale = 1.0 / (1.0 - dropout_p)
    dropped = (out_train == 0.0)
    kept_ok = jnp.isclose(out_train, ref * scale, rtol=1e-5, atol=1e-5)
    assert bool(jnp.all(dropped | kept_ok)), "training-mode dropout semantics mismatch"
    zero_frac = float(jnp.mean(dropped.astype(jnp.float32)))
    assert 0.0 < zero_frac < 0.35, f"dropout rate looks off: {zero_frac}"

    print("KERNEL_OK")
</pallas_src>

<mosaic_0001>
module attributes {stable_mosaic.version = 11 : i64} {
  func.func @_pos_enc_kernel(%arg0: i32, %arg1: i32, %arg2: memref<1xi32, #tpu.memory_space<smem>>, %arg3: memref<8x64xf32, #tpu.memory_space<vmem>>, %arg4: memref<8x32xf32, #tpu.memory_space<vmem>>, %arg5: memref<8x64xf32, #tpu.memory_space<vmem>>) attributes {dimension_semantics = [#tpu.dimension_semantics<parallel>, #tpu.dimension_semantics<parallel>], iteration_bounds = array<i64: 1, 1>, scalar_prefetch = 1 : i64, scratch_operands = 0 : i64, tpu.core_type = #tpu.core_type<tc>, window_params = [{transform_indices = @transform_0, window_bounds = array<i64: 8, 64>}, {transform_indices = @transform_1, window_bounds = array<i64: 8, 32>}, {transform_indices = @transform_2, window_bounds = array<i64: 8, 64>}]} {
    %c0 = arith.constant 0 : index
    %c0_0 = arith.constant 0 : index
    %0 = vector.load %arg3[%c0, %c0_0] : memref<8x64xf32, #tpu.memory_space<vmem>>, vector<8x64xf32>
    %c0_1 = arith.constant 0 : index
    %c0_2 = arith.constant 0 : index
    %1 = vector.load %arg4[%c0_1, %c0_2] : memref<8x32xf32, #tpu.memory_space<vmem>>, vector<8x32xf32>
    %2 = tpu.concatenate %1, %1 in 1 : vector<8x32xf32>, vector<8x32xf32> -> vector<8x64xf32>
    %3 = arith.addf %0, %2 : vector<8x64xf32>
    %c0_3 = arith.constant 0 : index
    %c0_4 = arith.constant 0 : index
    %4 = vector.load %arg5[%c0_3, %c0_4] : memref<8x64xf32, #tpu.memory_space<vmem>>, vector<8x64xf32>
    tpu.vector_store %arg5[%c0_3, %c0_4], %3 {strides = array<i32>} : memref<8x64xf32, #tpu.memory_space<vmem>>, vector<8x64xf32>,
    return
  }
  func.func @transform_0(%arg0: i32, %arg1: i32, %arg2: memref<1xi32, #tpu.memory_space<smem>>) -> (i32, i32) {
    %c0_i32 = arith.constant 0 : i32
    return %arg0, %arg1 : i32, i32
  }
  func.func @transform_1(%arg0: i32, %arg1: i32, %arg2: memref<1xi32, #tpu.memory_space<smem>>) -> (i32, i32) {
    %c0_i32 = arith.constant 0 : i32
    %c0_i32_0 = arith.constant 0 : i32
    return %arg0, %c0_i32 : i32, i32
  }
  func.func @transform_2(%arg0: i32, %arg1: i32, %arg2: memref<1xi32, #tpu.memory_space<smem>>) -> (i32, i32) {
    %c0_i32 = arith.constant 0 : i32
    return %arg0, %arg1 : i32, i32
  }
}

</mosaic_0001>

<bundles_post_ra>
// kernel: tpu_custom_call.1
= control target key start
LH: loop header
LB: loop body
LE: loop exit
PB: predicated region body
PF: predicated region fallthrough
CT: control target
= control target key end

     0   :  { %9 = vsyncpa [#allocation5], 0  ;;  %s186_s0 = inlined_call_operand.<no memory space> [shape: s32[1], index: 0, kind: input, shape index: {}]   ;;  %s187_s1 = inlined_call_operand.hbm [shape: f32[8,64], index: 1, kind: input, shape index: {}]   ;;  %s188_s2 = inlined_call_operand.hbm [shape: f32[8,32], index: 2, kind: input, shape index: {}]   ;;  %s189_s3 = inlined_call_operand.hbm [shape: f32[8,64], index: 3, kind: output, shape index: {}]  }
   0x1   :  { %10 = vsyncpa [#allocation8], 0 }
   0x2   :  { %11 = vsyncpa [#allocation6], 0  ;;  %s17_s14 = sshll.u32 %s187_s1, 4  ;;  %s153_s15 = smov [#allocation4]   ;;  %s18_s14 = int_to_ptr.hbm [resolvable:$true] %s17_s14 }
   0x3   :  { %s19_s16 = sshll.u32 %s153_s15, 4  ;;  %s28_s18 = sshll.u32 %s188_s2, 4  ;;  %s20_s16 = int_to_ptr.vmem [resolvable:$true] %s19_s16  ;;  %s29_s18 = int_to_ptr.hbm [resolvable:$true] %s28_s18 }
   0x4   :  { %22 = dma.hbm_to_vmem [thread:$0]  %s18_s14, 128, %s20_s16, [#allocation5]  }
   0x5   :  { %s154_s19 = smov [#allocation7]  }
   0x6   :  { %s30_s20 = sshll.u32 %s154_s19, 4  ;;  %s31_s20 = int_to_ptr.vmem [resolvable:$true] %s30_s20 }
   0x7   :  { %33 = dma.hbm_to_vmem [thread:$0]  %s29_s18, 128, %s31_s20, [#allocation8]  }
   0x8   :  { %147 = dma.done.wait [#allocation5], 128  }
   0x9   :  { %148 = vsyncadd [#allocation5], 4294967168 }
   0xa   :  { %149 = dma.done.wait [#allocation8], 128  }
   0xb   :  { %150 = vsyncadd [#allocation8], 4294967168  ;;  %v43_v0 = vld [vmem:[#allocation7] sm:$0xff]  ;;  %s155_s1 = smov 32   ;;  %vm48_vm0 = vcmask 261120   ;;  %v42_v1 = vld [vmem:[#allocation4] sm:$0xff] }
   0xc   :  { %45 = vrot.lane.b32.xlu0 %v43_v0, %s155_s1  ;;  %s156_s21 = smov [#allocation9]   ;;  %s60_s2 = sshll.u32 %s189_s3, 4  ;;  %vm51_vm1 = vcmask 523264   ;;  %s61_s2 = int_to_ptr.hbm [resolvable:$true] %s60_s2 }
   0xd   :  { %s58_s22 = sshll.u32 %s156_s21, 4  ;;  %s59_s22 = int_to_ptr.vmem [resolvable:$true] %s58_s22 }
  0x7e   :  { %v46_v2 = vpop.permute.xlu0 %45 }
  0x7f   :  { %v49_v3 = vsel %vm48_vm0, %v43_v0, %v46_v2 }
  0x80   :  { %v50_v4 = vadd.f32 %v49_v3, %v42_v1 }
  0x82   :  { %52 = vst.msk [vmem:[#allocation9] sm:$0xff] %vm51_vm1, %v50_v4 }
  0x83   :  { %63 = dma.vmem_to_hbm [thread:$0]  %s59_s22, 128, %s61_s2, [#allocation6]  }
  0x84   :  { %151 = dma.done.wait [#allocation6], 128  }
  0x85   :  { %152 = vsyncadd [#allocation6], 4294967168 }
  0x86   :  { %68 = vsyncpa [#allocation5], 1 }
  0x87   :  { %69 = vsyncpa [#allocation8], 1 }
  0x88   :  { %70 = vsyncpa [#allocation6], 1 }

</bundles_post_ra>
